<compile_context>
chip_gen: v7x
topology: tpu7x:2x2x1
jax: 0.10.0
libtpu: 0.0.40
codegen_flags: <defaults>
</compile_context>

<pallas_src>
import numpy as np
import jax
import jax.numpy as jnp
from jax.experimental import pallas as pl
from jax.experimental.pallas import tpu as pltpu

LANE = 128
SUBLANE = 8


def _round_up(n, m):
    return ((n + m - 1) // m) * m


def _cdiv(a, b):
    return (a + b - 1) // b


# ----------------------------------------------------------------------------
# Kernel
# ----------------------------------------------------------------------------
def action_head_kernel(x_ref, w1_ref, b1_ref, w2_ref, b2_ref,
                       w3_ref, b3_ref, w4_ref, b4_ref, o_ref):
    # bf16 MXU operands, f32 accumulation, f32 elementwise epilogues.
    x = x_ref[...].astype(jnp.bfloat16)
    h = jnp.dot(x, w1_ref[...], preferred_element_type=jnp.float32) + b1_ref[...]
    h = jnp.maximum(h, 0.0)
    h = jnp.dot(h.astype(jnp.bfloat16), w2_ref[...],
                preferred_element_type=jnp.float32) + b2_ref[...]
    h = jnp.maximum(h, 0.0)
    h = jnp.dot(h.astype(jnp.bfloat16), w3_ref[...],
                preferred_element_type=jnp.float32) + b3_ref[...]
    h = jnp.maximum(h, 0.0)
    h = jnp.dot(h.astype(jnp.bfloat16), w4_ref[...],
                preferred_element_type=jnp.float32) + b4_ref[...]
    o_ref[...] = jnp.tanh(h).astype(o_ref.dtype)


# ----------------------------------------------------------------------------
# Parameter init / packing
# ----------------------------------------------------------------------------
def init_params(key, hidden_size, act_dim):
    """Synthetic init mimicking torch.nn.Linear's U(-1/sqrt(fan_in), ...).
    Weights stored pre-transposed as (in, out); biases as (1, out)."""
    dims = [(hidden_size, hidden_size),
            (hidden_size, hidden_size),
            (hidden_size, hidden_size // 2),
            (hidden_size // 2, act_dim)]
    params = {}
    for idx, (fan_in, fan_out) in enumerate(dims, start=1):
        key, kw, kb = jax.random.split(key, 3)
        bound = 1.0 / np.sqrt(fan_in)
        params[f"w{idx}"] = jax.random.uniform(
            kw, (fan_in, fan_out), jnp.float32, -bound, bound)
        params[f"b{idx}"] = jax.random.uniform(
            kb, (1, fan_out), jnp.float32, -bound, bound)
    return params


def pack_params(params):
    """One-time weight prep: zero-pad every lane dim to a multiple of 128 and
    cast matmul weights to bf16.  Biases stay f32 (f32 elementwise path)."""
    packed = {}
    for idx in range(1, 5):
        w = params[f"w{idx}"]
        b = params[f"b{idx}"]
        fi, fo = w.shape
        fip, fop = _round_up(fi, LANE), _round_up(fo, LANE)
        wp = jnp.zeros((fip, fop), jnp.float32).at[:fi, :fo].set(w)
        bp = jnp.zeros((1, fop), jnp.float32).at[:, :fo].set(b)
        packed[f"w{idx}"] = wp.astype(jnp.bfloat16)
        packed[f"b{idx}"] = bp
    return packed


# ----------------------------------------------------------------------------
# Forward wrapper
# ----------------------------------------------------------------------------
def _vmem_capacity_bytes():
    try:
        cap = int(pltpu.get_tpu_info().vmem_capacity_bytes)
        if cap > 0:
            return cap
    except Exception:
        pass
    return 64 << 20  # conservative fallback (v7x per-TC VMEM)


def action_head_forward(x, packed, act_dim, *, tb=None):
    """x: (B, H) float32.  packed: output of pack_params.  Returns (B, act_dim) f32."""
    B, H = x.shape
    Hp = packed["w1"].shape[0]   # padded hidden (multiple of 128)
    Ap = packed["w4"].shape[1]   # padded act_dim (multiple of 128) -> lane-dense out

    # ---- VMEM budget (generation-aware) -------------------------------------
    vmem_cap = _vmem_capacity_bytes()
    vmem_budget = int(vmem_cap * 0.8)

    w_bytes = sum(int(np.prod(packed[f"w{i}"].shape)) * 2 for i in range(1, 5))  # bf16
    b_bytes = sum(int(np.prod(packed[f"b{i}"].shape)) * 4 for i in range(1, 5))  # f32
    # TODO(synk): if w_bytes alone exceeds the per-TC budget (H >= ~2048 on v7x),
    # switch to a K/N-tiled weight-streaming grid with an f32 accumulator.

    def tile_bytes(t, x_itemsize, x_bufs=2, single_buf_weights=True):
        wb = (w_bytes + b_bytes) * (1 if single_buf_weights else 2)
        io = x_bufs * t * Hp * x_itemsize + 2 * t * Ap * 4
        act = 4 * t * Hp * 4          # f32 intermediates + bf16 recast scratch
        return wb + io + act

    # ---- Batch tile selection ------------------------------------------------
    if tb is None:
        tb = 512 if vmem_cap >= (100 << 20) else 256   # bigger on v5e/v6e, bounded on v7x
    tb = max(SUBLANE, _round_up(min(tb, _round_up(B, SUBLANE)), SUBLANE))
    # Shrink until the tile fits the VMEM budget (worst-case f32 x DMA).
    while tb > SUBLANE and tile_bytes(tb, 4) > vmem_budget:
        tb = max(SUBLANE, _round_up(tb // 2, SUBLANE))

    # Bound over-padding: make the last tile nearly full.
    n_tiles = _cdiv(B, tb)
    tb_eff = _round_up(_cdiv(B, n_tiles), SUBLANE)
    Bp = n_tiles * tb_eff

    # ---- Input prep (avoid extra HBM pass when already aligned) -------------
    needs_pad = (Bp != B) or (Hp != H)
    if needs_pad:
        # Single fused pad + cast-to-bf16 pass (also halves padded-x DMA bytes).
        x_in = jnp.zeros((Bp, Hp), jnp.bfloat16).at[:B, :H].set(
            x.astype(jnp.bfloat16))
    else:
        x_in = x  # cast to bf16 inside the kernel; no wrapper-side pass
    x_itemsize = np.dtype(x_in.dtype).itemsize

    # Optional deeper x buffering if there is headroom and the grid is long.
    x_bufs = 2
    if n_tiles >= 3 and tile_bytes(tb_eff, x_itemsize, x_bufs=3) <= vmem_budget:
        x_bufs = 3

    vmem_limit = int(min(max(int(tile_bytes(tb_eff, x_itemsize, x_bufs) * 1.3),
                             16 << 20), vmem_budget))

    grid = (n_tiles,)

    def build_call(single_buf_weights, deep_x):
        def tile_spec(shape):  # batch-tiled operand
            if deep_x:
                return pl.BlockSpec(shape, lambda i: (i, 0),
                                    pipeline_mode=pl.Buffered(3))
            return pl.BlockSpec(shape, lambda i: (i, 0))

        def resident_spec(shape):  # constant block index -> fetched once, VMEM-resident
            if single_buf_weights:
                return pl.BlockSpec(shape, lambda i: (0, 0),
                                    pipeline_mode=pl.Buffered(1))
            return pl.BlockSpec(shape, lambda i: (0, 0))

        return pl.pallas_call(
            action_head_kernel,
            out_shape=jax.ShapeDtypeStruct((Bp, Ap), jnp.float32),
            grid=grid,
            in_specs=[
                tile_spec((tb_eff, Hp)),
                resident_spec(packed["w1"].shape), resident_spec(packed["b1"].shape),
                resident_spec(packed["w2"].shape), resident_spec(packed["b2"].shape),
                resident_spec(packed["w3"].shape), resident_spec(packed["b3"].shape),
                resident_spec(packed["w4"].shape), resident_spec(packed["b4"].shape),
            ],
            out_specs=pl.BlockSpec((tb_eff, Ap), lambda i: (i, 0)),
            compiler_params=pltpu.CompilerParams(
                dimension_semantics=("parallel",),
                vmem_limit_bytes=vmem_limit,
            ),
        )

    args = (x_in, packed["w1"], packed["b1"], packed["w2"], packed["b2"],
            packed["w3"], packed["b3"], packed["w4"], packed["b4"])

    try:
        out_pad = build_call(True, x_bufs == 3)(*args)
    except Exception:
        # Robust fallback: default double-buffering everywhere.
        out_pad = build_call(False, False)(*args)

    # Strip batch/lane padding.
    return out_pad[:B, :act_dim]


# ----------------------------------------------------------------------------
# Pure-JAX reference
# ----------------------------------------------------------------------------
def action_head_reference(x, params):
    h = jnp.maximum(x @ params["w1"] + params["b1"], 0.0)
    h = jnp.maximum(h @ params["w2"] + params["b2"], 0.0)
    h = jnp.maximum(h @ params["w3"] + params["b3"], 0.0)
    return jnp.tanh(h @ params["w4"] + params["b4"])


if __name__ == "__main__":
    # Small shapes consistent with the module (Ant env head).
    batch, hidden_size, act_dim = 2, 32, 8

    key = jax.random.PRNGKey(0)
    key, kx = jax.random.split(key)
    x = jax.random.normal(kx, (batch, hidden_size), jnp.float32)
    params = init_params(key, hidden_size, act_dim)
    packed = pack_params(params)

    out = jax.block_until_ready(action_head_forward(x, packed, act_dim))
    ref = jax.block_until_ready(action_head_reference(x, params))

    assert out.shape == (batch, act_dim)
    # bf16 matmul operands compound rounding over 4 layers -> looser tolerance
    # vs the f32 reference (by design; keep activations f32-only if tighter
    # parity with the torch module is required).
    np.testing.assert_allclose(np.asarray(out), np.asarray(ref),
                               rtol=2e-2, atol=2e-2)
    print("KERNEL_OK")
</pallas_src>

<mosaic_0001>
module attributes {stable_mosaic.version = 11 : i64} {
  func.func @action_head_kernel(%arg0: i32, %arg1: memref<8x128xbf16, #tpu.memory_space<vmem>>, %arg2: memref<128x128xbf16, #tpu.memory_space<vmem>>, %arg3: memref<1x128xf32, #tpu.memory_space<vmem>>, %arg4: memref<128x128xbf16, #tpu.memory_space<vmem>>, %arg5: memref<1x128xf32, #tpu.memory_space<vmem>>, %arg6: memref<128x128xbf16, #tpu.memory_space<vmem>>, %arg7: memref<1x128xf32, #tpu.memory_space<vmem>>, %arg8: memref<128x128xbf16, #tpu.memory_space<vmem>>, %arg9: memref<1x128xf32, #tpu.memory_space<vmem>>, %arg10: memref<8x128xf32, #tpu.memory_space<vmem>>) attributes {dimension_semantics = [#tpu.dimension_semantics<parallel>], iteration_bounds = array<i64: 1>, scalar_prefetch = 0 : i64, scratch_operands = 0 : i64, tpu.core_type = #tpu.core_type<tc>, window_params = [{transform_indices = @transform_0, window_bounds = array<i64: 8, 128>}, {pipeline_mode = #tpu.pipeline_mode<synchronous>, transform_indices = @transform_1, window_bounds = array<i64: 128, 128>}, {pipeline_mode = #tpu.pipeline_mode<synchronous>, transform_indices = @transform_2, window_bounds = array<i64: 1, 128>}, {pipeline_mode = #tpu.pipeline_mode<synchronous>, transform_indices = @transform_3, window_bounds = array<i64: 128, 128>}, {pipeline_mode = #tpu.pipeline_mode<synchronous>, transform_indices = @transform_4, window_bounds = array<i64: 1, 128>}, {pipeline_mode = #tpu.pipeline_mode<synchronous>, transform_indices = @transform_5, window_bounds = array<i64: 128, 128>}, {pipeline_mode = #tpu.pipeline_mode<synchronous>, transform_indices = @transform_6, window_bounds = array<i64: 1, 128>}, {pipeline_mode = #tpu.pipeline_mode<synchronous>, transform_indices = @transform_7, window_bounds = array<i64: 128, 128>}, {pipeline_mode = #tpu.pipeline_mode<synchronous>, transform_indices = @transform_8, window_bounds = array<i64: 1, 128>}, {transform_indices = @transform_9, window_bounds = array<i64: 8, 128>}]} {
    %c0 = arith.constant 0 : index
    %c0_0 = arith.constant 0 : index
    %0 = vector.load %arg1[%c0, %c0_0] : memref<8x128xbf16, #tpu.memory_space<vmem>>, vector<8x128xbf16>
    %c0_1 = arith.constant 0 : index
    %c0_2 = arith.constant 0 : index
    %1 = vector.load %arg2[%c0_1, %c0_2] : memref<128x128xbf16, #tpu.memory_space<vmem>>, vector<128x128xbf16>
    %cst = arith.constant dense<0.000000e+00> : vector<8x128xf32>
    %2 = tpu.matmul %0, %1, %cst {dimension_numbers = #tpu.dot_dimension_numbers<[1], [0], [0], [1], [0, 0, 1, 1], [], []>} : vector<8x128xbf16>, vector<128x128xbf16>, vector<8x128xf32> -> vector<8x128xf32>
    %c0_3 = arith.constant 0 : index
    %c0_4 = arith.constant 0 : index
    %3 = vector.load %arg3[%c0_3, %c0_4] : memref<1x128xf32, #tpu.memory_space<vmem>>, vector<1x128xf32>
    %4 = vector.broadcast %3 : vector<1x128xf32> to vector<8x128xf32>
    %5 = arith.addf %2, %4 : vector<8x128xf32>
    %cst_5 = arith.constant 0.000000e+00 : f32
    %6 = vector.broadcast %cst_5 : f32 to vector<8x128xf32>
    %7 = arith.maximumf %5, %6 : vector<8x128xf32>
    %8 = arith.truncf %7 : vector<8x128xf32> to vector<8x128xbf16>
    %c0_6 = arith.constant 0 : index
    %c0_7 = arith.constant 0 : index
    %9 = vector.load %arg4[%c0_6, %c0_7] : memref<128x128xbf16, #tpu.memory_space<vmem>>, vector<128x128xbf16>
    %cst_8 = arith.constant dense<0.000000e+00> : vector<8x128xf32>
    %10 = tpu.matmul %8, %9, %cst_8 {dimension_numbers = #tpu.dot_dimension_numbers<[1], [0], [0], [1], [0, 0, 1, 1], [], []>} : vector<8x128xbf16>, vector<128x128xbf16>, vector<8x128xf32> -> vector<8x128xf32>
    %c0_9 = arith.constant 0 : index
    %c0_10 = arith.constant 0 : index
    %11 = vector.load %arg5[%c0_9, %c0_10] : memref<1x128xf32, #tpu.memory_space<vmem>>, vector<1x128xf32>
    %12 = vector.broadcast %11 : vector<1x128xf32> to vector<8x128xf32>
    %13 = arith.addf %10, %12 : vector<8x128xf32>
    %cst_11 = arith.constant 0.000000e+00 : f32
    %14 = vector.broadcast %cst_11 : f32 to vector<8x128xf32>
    %15 = arith.maximumf %13, %14 : vector<8x128xf32>
    %16 = arith.truncf %15 : vector<8x128xf32> to vector<8x128xbf16>
    %c0_12 = arith.constant 0 : index
    %c0_13 = arith.constant 0 : index
    %17 = vector.load %arg6[%c0_12, %c0_13] : memref<128x128xbf16, #tpu.memory_space<vmem>>, vector<128x128xbf16>
    %cst_14 = arith.constant dense<0.000000e+00> : vector<8x128xf32>
    %18 = tpu.matmul %16, %17, %cst_14 {dimension_numbers = #tpu.dot_dimension_numbers<[1], [0], [0], [1], [0, 0, 1, 1], [], []>} : vector<8x128xbf16>, vector<128x128xbf16>, vector<8x128xf32> -> vector<8x128xf32>
    %c0_15 = arith.constant 0 : index
    %c0_16 = arith.constant 0 : index
    %19 = vector.load %arg7[%c0_15, %c0_16] : memref<1x128xf32, #tpu.memory_space<vmem>>, vector<1x128xf32>
    %20 = vector.broadcast %19 : vector<1x128xf32> to vector<8x128xf32>
    %21 = arith.addf %18, %20 : vector<8x128xf32>
    %cst_17 = arith.constant 0.000000e+00 : f32
    %22 = vector.broadcast %cst_17 : f32 to vector<8x128xf32>
    %23 = arith.maximumf %21, %22 : vector<8x128xf32>
    %24 = arith.truncf %23 : vector<8x128xf32> to vector<8x128xbf16>
    %c0_18 = arith.constant 0 : index
    %c0_19 = arith.constant 0 : index
    %25 = vector.load %arg8[%c0_18, %c0_19] : memref<128x128xbf16, #tpu.memory_space<vmem>>, vector<128x128xbf16>
    %cst_20 = arith.constant dense<0.000000e+00> : vector<8x128xf32>
    %26 = tpu.matmul %24, %25, %cst_20 {dimension_numbers = #tpu.dot_dimension_numbers<[1], [0], [0], [1], [0, 0, 1, 1], [], []>} : vector<8x128xbf16>, vector<128x128xbf16>, vector<8x128xf32> -> vector<8x128xf32>
    %c0_21 = arith.constant 0 : index
    %c0_22 = arith.constant 0 : index
    %27 = vector.load %arg9[%c0_21, %c0_22] : memref<1x128xf32, #tpu.memory_space<vmem>>, vector<1x128xf32>
    %28 = vector.broadcast %27 : vector<1x128xf32> to vector<8x128xf32>
    %29 = arith.addf %26, %28 : vector<8x128xf32>
    %30 = math.tanh %29 : vector<8x128xf32>
    %c0_23 = arith.constant 0 : index
    %c0_24 = arith.constant 0 : index
    %31 = vector.load %arg10[%c0_23, %c0_24] : memref<8x128xf32, #tpu.memory_space<vmem>>, vector<8x128xf32>
    tpu.vector_store %arg10[%c0_23, %c0_24], %30 {strides = array<i32>} : memref<8x128xf32, #tpu.memory_space<vmem>>, vector<8x128xf32>,
    return
  }
  func.func @transform_0(%arg0: i32) -> (i32, i32) {
    %c0_i32 = arith.constant 0 : i32
    %c0_i32_0 = arith.constant 0 : i32
    return %arg0, %c0_i32 : i32, i32
  }
  func.func @transform_1(%arg0: i32) -> (i32, i32) {
    %c0_i32 = arith.constant 0 : i32
    %c0_i32_0 = arith.constant 0 : i32
    %c0_i32_1 = arith.constant 0 : i32
    return %c0_i32, %c0_i32_0 : i32, i32
  }
  func.func @transform_2(%arg0: i32) -> (i32, i32) {
    %c0_i32 = arith.constant 0 : i32
    %c0_i32_0 = arith.constant 0 : i32
    %c0_i32_1 = arith.constant 0 : i32
    return %c0_i32, %c0_i32_0 : i32, i32
  }
  func.func @transform_3(%arg0: i32) -> (i32, i32) {
    %c0_i32 = arith.constant 0 : i32
    %c0_i32_0 = arith.constant 0 : i32
    %c0_i32_1 = arith.constant 0 : i32
    return %c0_i32, %c0_i32_0 : i32, i32
  }
  func.func @transform_4(%arg0: i32) -> (i32, i32) {
    %c0_i32 = arith.constant 0 : i32
    %c0_i32_0 = arith.constant 0 : i32
    %c0_i32_1 = arith.constant 0 : i32
    return %c0_i32, %c0_i32_0 : i32, i32
  }
  func.func @transform_5(%arg0: i32) -> (i32, i32) {
    %c0_i32 = arith.constant 0 : i32
    %c0_i32_0 = arith.constant 0 : i32
    %c0_i32_1 = arith.constant 0 : i32
    return %c0_i32, %c0_i32_0 : i32, i32
  }
  func.func @transform_6(%arg0: i32) -> (i32, i32) {
    %c0_i32 = arith.constant 0 : i32
    %c0_i32_0 = arith.constant 0 : i32
    %c0_i32_1 = arith.constant 0 : i32
    return %c0_i32, %c0_i32_0 : i32, i32
  }
  func.func @transform_7(%arg0: i32) -> (i32, i32) {
    %c0_i32 = arith.constant 0 : i32
    %c0_i32_0 = arith.constant 0 : i32
    %c0_i32_1 = arith.constant 0 : i32
    return %c0_i32, %c0_i32_0 : i32, i32
  }
  func.func @transform_8(%arg0: i32) -> (i32, i32) {
    %c0_i32 = arith.constant 0 : i32
    %c0_i32_0 = arith.constant 0 : i32
    %c0_i32_1 = arith.constant 0 : i32
    return %c0_i32, %c0_i32_0 : i32, i32
  }
  func.func @transform_9(%arg0: i32) -> (i32, i32) {
    %c0_i32 = arith.constant 0 : i32
    %c0_i32_0 = arith.constant 0 : i32
    return %arg0, %c0_i32 : i32, i32
  }
}

module attributes {stable_mosaic.version = 11 : i64} {
  func.func @action_head_kernel(%arg0: i32, %arg1: memref<8x128xbf16, #tpu.memory_space<vmem>>, %arg2: memref<128x128xbf16, #tpu.memory_space<vmem>>, %arg3: memref<1x128xf32, #tpu.memory_space<vmem>>, %arg4: memref<128x128xbf16, #tpu.memory_space<vmem>>, %arg5: memref<1x128xf32, #tpu.memory_space<vmem>>, %arg6: memref<128x128xbf16, #tpu.memory_space<vmem>>, %arg7: memref<1x128xf32, #tpu.memory_space<vmem>>, %arg8: memref<128x128xbf16, #tpu.memory_space<vmem>>, %arg9: memref<1x128xf32, #tpu.memory_space<vmem>>, %arg10: memref<8x128xf32, #tpu.memory_space<vmem>>) attributes {dimension_semantics = [#tpu.dimension_semantics<parallel>], iteration_bounds = array<i64: 1>, scalar_prefetch = 0 : i64, scratch_operands = 0 : i64, tpu.core_type = #tpu.core_type<tc>, window_params = [{transform_indices = @transform_0, window_bounds = array<i64: 8, 128>}, {pipeline_mode = #tpu.pipeline_mode<synchronous>, transform_indices = @transform_1, window_bounds = array<i64: 128, 128>}, {pipeline_mode = #tpu.pipeline_mode<synchronous>, transform_indices = @transform_2, window_bounds = array<i64: 1, 128>}, {pipeline_mode = #tpu.pipeline_mode<synchronous>, transform_indices = @transform_3, window_bounds = array<i64: 128, 128>}, {pipeline_mode = #tpu.pipeline_mode<synchronous>, transform_indices = @transform_4, window_bounds = array<i64: 1, 128>}, {pipeline_mode = #tpu.pipeline_mode<synchronous>, transform_indices = @transform_5, window_bounds = array<i64: 128, 128>}, {pipeline_mode = #tpu.pipeline_mode<synchronous>, transform_indices = @transform_6, window_bounds = array<i64: 1, 128>}, {pipeline_mode = #tpu.pipeline_mode<synchronous>, transform_indices = @transform_7, window_bounds = array<i64: 128, 128>}, {pipeline_mode = #tpu.pipeline_mode<synchronous>, transform_indices = @transform_8, window_bounds = array<i64: 1, 128>}, {transform_indices = @transform_9, window_bounds = array<i64: 8, 128>}]} {
    %c0 = arith.constant 0 : index
    %c0_0 = arith.constant 0 : index
    %0 = vector.load %arg1[%c0, %c0_0] : memref<8x128xbf16, #tpu.memory_space<vmem>>, vector<8x128xbf16>
    %c0_1 = arith.constant 0 : index
    %c0_2 = arith.constant 0 : index
    %1 = vector.load %arg2[%c0_1, %c0_2] : memref<128x128xbf16, #tpu.memory_space<vmem>>, vector<128x128xbf16>
    %cst = arith.constant dense<0.000000e+00> : vector<8x128xf32>
    %2 = tpu.matmul %0, %1, %cst {dimension_numbers = #tpu.dot_dimension_numbers<[1], [0], [0], [1], [0, 0, 1, 1], [], []>} : vector<8x128xbf16>, vector<128x128xbf16>, vector<8x128xf32> -> vector<8x128xf32>
    %c0_3 = arith.constant 0 : index
    %c0_4 = arith.constant 0 : index
    %3 = vector.load %arg3[%c0_3, %c0_4] : memref<1x128xf32, #tpu.memory_space<vmem>>, vector<1x128xf32>
    %4 = vector.broadcast %3 : vector<1x128xf32> to vector<8x128xf32>
    %5 = arith.addf %2, %4 : vector<8x128xf32>
    %cst_5 = arith.constant 0.000000e+00 : f32
    %6 = vector.broadcast %cst_5 : f32 to vector<8x128xf32>
    %7 = arith.maximumf %5, %6 : vector<8x128xf32>
    %8 = arith.truncf %7 : vector<8x128xf32> to vector<8x128xbf16>
    %c0_6 = arith.constant 0 : index
    %c0_7 = arith.constant 0 : index
    %9 = vector.load %arg4[%c0_6, %c0_7] : memref<128x128xbf16, #tpu.memory_space<vmem>>, vector<128x128xbf16>
    %cst_8 = arith.constant dense<0.000000e+00> : vector<8x128xf32>
    %10 = tpu.matmul %8, %9, %cst_8 {dimension_numbers = #tpu.dot_dimension_numbers<[1], [0], [0], [1], [0, 0, 1, 1], [], []>} : vector<8x128xbf16>, vector<128x128xbf16>, vector<8x128xf32> -> vector<8x128xf32>
    %c0_9 = arith.constant 0 : index
    %c0_10 = arith.constant 0 : index
    %11 = vector.load %arg5[%c0_9, %c0_10] : memref<1x128xf32, #tpu.memory_space<vmem>>, vector<1x128xf32>
    %12 = vector.broadcast %11 : vector<1x128xf32> to vector<8x128xf32>
    %13 = arith.addf %10, %12 : vector<8x128xf32>
    %cst_11 = arith.constant 0.000000e+00 : f32
    %14 = vector.broadcast %cst_11 : f32 to vector<8x128xf32>
    %15 = arith.maximumf %13, %14 : vector<8x128xf32>
    %16 = arith.truncf %15 : vector<8x128xf32> to vector<8x128xbf16>
    %c0_12 = arith.constant 0 : index
    %c0_13 = arith.constant 0 : index
    %17 = vector.load %arg6[%c0_12, %c0_13] : memref<128x128xbf16, #tpu.memory_space<vmem>>, vector<128x128xbf16>
    %cst_14 = arith.constant dense<0.000000e+00> : vector<8x128xf32>
    %18 = tpu.matmul %16, %17, %cst_14 {dimension_numbers = #tpu.dot_dimension_numbers<[1], [0], [0], [1], [0, 0, 1, 1], [], []>} : vector<8x128xbf16>, vector<128x128xbf16>, vector<8x128xf32> -> vector<8x128xf32>
    %c0_15 = arith.constant 0 : index
    %c0_16 = arith.constant 0 : index
    %19 = vector.load %arg7[%c0_15, %c0_16] : memref<1x128xf32, #tpu.memory_space<vmem>>, vector<1x128xf32>
    %20 = vector.broadcast %19 : vector<1x128xf32> to vector<8x128xf32>
    %21 = arith.addf %18, %20 : vector<8x128xf32>
    %cst_17 = arith.constant 0.000000e+00 : f32
    %22 = vector.broadcast %cst_17 : f32 to vector<8x128xf32>
    %23 = arith.maximumf %21, %22 : vector<8x128xf32>
    %24 = arith.truncf %23 : vector<8x128xf32> to vector<8x128xbf16>
    %c0_18 = arith.constant 0 : index
    %c0_19 = arith.constant 0 : index
    %25 = vector.load %arg8[%c0_18, %c0_19] : memref<128x128xbf16, #tpu.memory_space<vmem>>, vector<128x128xbf16>
    %cst_20 = arith.constant dense<0.000000e+00> : vector<8x128xf32>
    %26 = tpu.matmul %24, %25, %cst_20 {dimension_numbers = #tpu.dot_dimension_numbers<[1], [0], [0], [1], [0, 0, 1, 1], [], []>} : vector<8x128xbf16>, vector<128x128xbf16>, vector<8x128xf32> -> vector<8x128xf32>
    %c0_21 = arith.constant 0 : index
    %c0_22 = arith.constant 0 : index
    %27 = vector.load %arg9[%c0_21, %c0_22] : memref<1x128xf32, #tpu.memory_space<vmem>>, vector<1x128xf32>
    %28 = vector.broadcast %27 : vector<1x128xf32> to vector<8x128xf32>
    %29 = arith.addf %26, %28 : vector<8x128xf32>
    %30 = math.tanh %29 : vector<8x128xf32>
    %c0_23 = arith.constant 0 : index
    %c0_24 = arith.constant 0 : index
    %31 = vector.load %arg10[%c0_23, %c0_24] : memref<8x128xf32, #tpu.memory_space<vmem>>, vector<8x128xf32>
    tpu.vector_store %arg10[%c0_23, %c0_24], %30 {strides = array<i32>} : memref<8x128xf32, #tpu.memory_space<vmem>>, vector<8x128xf32>,
    return
  }
  func.func @transform_0(%arg0: i32) -> (i32, i32) {
    %c0_i32 = arith.constant 0 : i32
    %c0_i32_0 = arith.constant 0 : i32
    return %arg0, %c0_i32 : i32, i32
  }
  func.func @transform_1(%arg0: i32) -> (i32, i32) {
    %c0_i32 = arith.constant 0 : i32
    %c0_i32_0 = arith.constant 0 : i32
    %c0_i32_1 = arith.constant 0 : i32
    return %c0_i32, %c0_i32_0 : i32, i32
  }
  func.func @transform_2(%arg0: i32) -> (i32, i32) {
    %c0_i32 = arith.constant 0 : i32
    %c0_i32_0 = arith.constant 0 : i32
    %c0_i32_1 = arith.constant 0 : i32
    return %c0_i32, %c0_i32_0 : i32, i32
  }
  func.func @transform_3(%arg0: i32) -> (i32, i32) {
    %c0_i32 = arith.constant 0 : i32
    %c0_i32_0 = arith.constant 0 : i32
    %c0_i32_1 = arith.constant 0 : i32
    return %c0_i32, %c0_i32_0 : i32, i32
  }
  func.func @transform_4(%arg0: i32) -> (i32, i32) {
    %c0_i32 = arith.constant 0 : i32
    %c0_i32_0 = arith.constant 0 : i32
    %c0_i32_1 = arith.constant 0 : i32
    return %c0_i32, %c0_i32_0 : i32, i32
  }
  func.func @transform_5(%arg0: i32) -> (i32, i32) {
    %c0_i32 = arith.constant 0 : i32
    %c0_i32_0 = arith.constant 0 : i32
    %c0_i32_1 = arith.constant 0 : i32
    return %c0_i32, %c0_i32_0 : i32, i32
  }
  func.func @transform_6(%arg0: i32) -> (i32, i32) {
    %c0_i32 = arith.constant 0 : i32
    %c0_i32_0 = arith.constant 0 : i32
    %c0_i32_1 = arith.constant 0 : i32
    return %c0_i32, %c0_i32_0 : i32, i32
  }
  func.func @transform_7(%arg0: i32) -> (i32, i32) {
    %c0_i32 = arith.constant 0 : i32
    %c0_i32_0 = arith.constant 0 : i32
    %c0_i32_1 = arith.constant 0 : i32
    return %c0_i32, %c0_i32_0 : i32, i32
  }
  func.func @transform_8(%arg0: i32) -> (i32, i32) {
    %c0_i32 = arith.constant 0 : i32
    %c0_i32_0 = arith.constant 0 : i32
    %c0_i32_1 = arith.constant 0 : i32
    return %c0_i32, %c0_i32_0 : i32, i32
  }
  func.func @transform_9(%arg0: i32) -> (i32, i32) {
    %c0_i32 = arith.constant 0 : i32
    %c0_i32_0 = arith.constant 0 : i32
    return %arg0, %c0_i32 : i32, i32
  }
}

</mosaic_0001>

<bundles_post_ra>
// kernel: tpu_custom_call.1
= control target key start
LH: loop header
LB: loop body
LE: loop exit
PB: predicated region body
PF: predicated region fallthrough
CT: control target
= control target key end

     0   :  { %14 = vsyncpa [#allocation3], 0  ;;  %s1102_s0 = inlined_call_operand.hbm [shape: bf16[8,128], index: 0, kind: input, shape index: {}]   ;;  %s1103_s1 = inlined_call_operand.hbm [shape: bf16[128,128], index: 1, kind: input, shape index: {}]   ;;  %s1104_s2 = inlined_call_operand.vmem [shape: f32[1,128], index: 2, kind: input, shape index: {}]   ;;  %s1105_s3 = inlined_call_operand.hbm [shape: bf16[128,128], index: 3, kind: input, shape index: {}]   ;;  %s1106_s4 = inlined_call_operand.vmem [shape: f32[1,128], index: 4, kind: input, shape index: {}]   ;;  %s1107_s5 = inlined_call_operand.hbm [shape: bf16[128,128], index: 5, kind: input, shape index: {}]   ;;  %s1108_s6 = inlined_call_operand.vmem [shape: f32[1,128], index: 6, kind: input, shape index: {}]   ;;  %s1109_s7 = inlined_call_operand.hbm [shape: bf16[128,128], index: 7, kind: input, shape index: {}]   ;;  %s1110_s8 = inlined_call_operand.vmem [shape: f32[1,128], index: 8, kind: input, shape index: {}]   ;;  %s1111_s9 = inlined_call_operand.hbm [shape: f32[8,128], index: 9, kind: output, shape index: {}]  }
   0x1   :  { %15 = vsyncpa [#allocation6], 0 }
   0x2   :  { %16 = vsyncpa [#allocation9], 0 }
   0x3   :  { %17 = vsyncpa [#allocation4], 0  ;;  %s906_s30 = smov [#allocation5]   ;;  %s766_s13 = scalar_lea.hbm %s1103_s1, 1024 }
   0x4   :  { %s33_s10 = sshll.u32 %s906_s30, 4  ;;  %p767_p0 = scmp.ne.s32.totalorder %s1103_s1, %s766_s13  ;;  %s34_s10 = int_to_ptr.vmem [resolvable:$true] %s33_s10 }
   0x5   :  { %p770_p1 = scmp.lt.u32.totalorder %s766_s13, %s1103_s1 }
   0x7   :  { %p772_p2 = pnand %p770_p1, %p767_p0 }
   0x9   :  { %775 = shalt.err (!%p772_p2)
}
   0xa   :  { %s776_s18 = scalar_lea.vmem %s34_s10, 1024  ;;  %p781_p4 = scmp.lt.s32.totalorder %s34_s10, %s34_s10 }
   0xb   :  { %p777_p3 = scmp.ne.s32.totalorder %s34_s10, %s776_s18  ;;  %p782_p5 = scmp.lt.s32.totalorder %s776_s18, %s776_s18 }
   0xd   :  { %p783_p6 = por %p782_p5, %p781_p4 }
   0xf   :  { %p784_p7 = pnand %p783_p6, %p777_p3 }
  0x11   :  { %787 = shalt.err (!%p784_p7)
}
  0x12   :  { %s907_s19 = smov 64   ;;  %s908_s20 = smov 4  }
  0x13   :  { %39 = dma.hbm_to_vmem [thread:$0]  %s1103_s1, 1024, %s34_s10, [#allocation6], %s907_s19, %s907_s19, %s908_s20  }
  0x14   :  { %s909_s23 = smov [#allocation8]   ;;  %s910_s25 = smov [#allocation2]  }
  0x15   :  { %s61_s24 = sshll.u32 %s909_s23, 4  ;;  %s24_s26 = sshll.u32 %s910_s25, 4  ;;  %s62_s24 = int_to_ptr.vmem [resolvable:$true] %s61_s24  ;;  %s25_s26 = int_to_ptr.vmem [resolvable:$true] %s24_s26 }
  0x16   :  { %s788_s29 = scalar_lea.hbm %s1107_s5, 1024 }
  0x17   :  { %p789_p8 = scmp.ne.s32.totalorder %s1107_s5, %s788_s29  ;;  %p792_p9 = scmp.lt.u32.totalorder %s788_s29, %s1107_s5 }
  0x19   :  { %p794_p10 = pnand %p792_p9, %p789_p8 }
  0x1b   :  { %797 = shalt.err (!%p794_p10)
}
  0x1c   :  { %s798_s1 = scalar_lea.vmem %s62_s24, 1024  ;;  %p803_p12 = scmp.lt.s32.totalorder %s62_s24, %s62_s24 }
  0x1d   :  { %p799_p11 = scmp.ne.s32.totalorder %s62_s24, %s798_s1  ;;  %p804_p13 = scmp.lt.s32.totalorder %s798_s1, %s798_s1 }
  0x1f   :  { %p805_p0 = por %p804_p13, %p803_p12 }
  0x21   :  { %p806_p1 = pnand %p805_p0, %p799_p11 }
  0x23   :  { %809 = shalt.err (!%p806_p1)
}
  0x24   :  { %67 = dma.hbm_to_vmem [thread:$0]  %s1107_s5, 1024, %s62_s24, [#allocation9], %s907_s19, %s907_s19, %s908_s20  }
  0x25   :  { %s810_s17 = scalar_lea.hbm %s1102_s0, 64 }
  0x26   :  { %p811_p2 = scmp.ne.s32.totalorder %s1102_s0, %s810_s17  ;;  %p814_p3 = scmp.lt.u32.totalorder %s810_s17, %s1102_s0 }
  0x28   :  { %p816_p4 = pnand %p814_p3, %p811_p2 }
  0x2a   :  { %819 = shalt.err (!%p816_p4)
}
  0x2b   :  { %s820_s25 = scalar_lea.vmem %s25_s26, 64  ;;  %p825_p6 = scmp.lt.s32.totalorder %s25_s26, %s25_s26 }
  0x2c   :  { %p821_p5 = scmp.ne.s32.totalorder %s25_s26, %s820_s25  ;;  %p826_p7 = scmp.lt.s32.totalorder %s820_s25, %s820_s25 }
  0x2e   :  { %p827_p8 = por %p826_p7, %p825_p6 }
  0x30   :  { %p828_p9 = pnand %p827_p8, %p821_p5 }
  0x32   :  { %831 = shalt.err (!%p828_p9)
}
  0x33   :  { %27 = dma.hbm_to_vmem [thread:$0]  %s1102_s0, 64, %s25_s26, [#allocation3]  }
  0x34   :  { %s911_s27 = smov [#allocation7]   ;;  %s912_s29 = smov [#allocation10]  }
  0x35   :  { %s47_s28 = sshll.u32 %s911_s27, 4  ;;  %s75_s30 = sshll.u32 %s912_s29, 4  ;;  %s48_s28 = int_to_ptr.vmem [resolvable:$true] %s47_s28  ;;  %s76_s30 = int_to_ptr.vmem [resolvable:$true] %s75_s30 }
  0x36   :  { %s832_s13 = scalar_lea.hbm %s1105_s3, 1024 }
  0x37   :  { %p833_p10 = scmp.ne.s32.totalorder %s1105_s3, %s832_s13  ;;  %p836_p11 = scmp.lt.u32.totalorder %s832_s13, %s1105_s3 }
  0x39   :  { %p838_p12 = pnand %p836_p11, %p833_p10 }
  0x3b   :  { %841 = shalt.err (!%p838_p12)
}
  0x3c   :  { %s842_s0 = scalar_lea.vmem %s48_s28, 1024  ;;  %p847_p0 = scmp.lt.s32.totalorder %s48_s28, %s48_s28 }
  0x3d   :  { %p843_p13 = scmp.ne.s32.totalorder %s48_s28, %s842_s0  ;;  %p848_p1 = scmp.lt.s32.totalorder %s842_s0, %s842_s0 }
  0x3f   :  { %p849_p2 = por %p848_p1, %p847_p0 }
  0x41   :  { %p850_p3 = pnand %p849_p2, %p843_p13 }
  0x43   :  { %853 = shalt.err (!%p850_p3)
}
  0x44   :  { %53 = dma.hbm_to_vmem [thread:$0]  %s1105_s3, 1024, %s48_s28, [#allocation6], %s907_s19, %s907_s19, %s908_s20  }
  0x45   :  { %s854_s21 = scalar_lea.hbm %s1109_s7, 1024 }
  0x46   :  { %p855_p4 = scmp.ne.s32.totalorder %s1109_s7, %s854_s21  ;;  %p858_p5 = scmp.lt.u32.totalorder %s854_s21, %s1109_s7 }
  0x48   :  { %p860_p6 = pnand %p858_p5, %p855_p4 }
  0x4a   :  { %863 = shalt.err (!%p860_p6)
}
  0x4b   :  { %s864_s24 = scalar_lea.vmem %s76_s30, 1024  ;;  %p869_p8 = scmp.lt.s32.totalorder %s76_s30, %s76_s30 }
  0x4c   :  { %p865_p7 = scmp.ne.s32.totalorder %s76_s30, %s864_s24  ;;  %p870_p9 = scmp.lt.s32.totalorder %s864_s24, %s864_s24 }
  0x4e   :  { %p871_p10 = por %p870_p9, %p869_p8 }
  0x50   :  { %p872_p11 = pnand %p871_p10, %p865_p7 }
  0x52   :  { %875 = shalt.err (!%p872_p11)
}
  0x53   :  { %81 = dma.hbm_to_vmem [thread:$0]  %s1109_s7, 1024, %s76_s30, [#allocation9], %s907_s19, %s907_s19, %s908_s20  }
  0x54   :  { %898 = dma.done.wait [#allocation3], 64  }
  0x55   :  { %899 = vsyncadd [#allocation3], 4294967232 }
  0x56   :  { %900 = dma.done.wait [#allocation6], 2048  }
  0x57   :  { %901 = vsyncadd [#allocation6], 4294965248 }
  0x58   :  { %902 = dma.done.wait [#allocation9], 2048  }
  0x59   :  { %903 = vsyncadd [#allocation9], 4294965248  ;;  %v913_v0 = vmov 0.0   ;;  %vm914_vm0 = vmmov 0   ;;  %v732_v1 = vld [vmem:[#allocation5] sm:$0xff]   ;;  %v733_v2 = vld [vmem:[#allocation5 + $0x8] sm:$0xff]  }
  0x5a   :  { %642 = vmatprep.subr.bf16.mxu0 %v913_v0  ;;  %658 = vmatprep.mubr.msk.bf16.mxu0 %vm914_vm0, %v913_v0  ;;  %v734_v3 = vld [vmem:[#allocation5 + $0x10] sm:$0xff]   ;;  %v740_v4 = vld [vmem:[#allocation7] sm:$0xff]   ;;  %v735_v5 = vld [vmem:[#allocation5 + $0x18] sm:$0xff]   ;;  %s915_s11 = smov [#allocation11]  }
  0x5b   :  { %662 = vmatprep.subr.bf16.mxu1 %v913_v0  ;;  %678 = vmatprep.mubr.msk.bf16.mxu1 %vm914_vm0, %v913_v0  ;;  %v741_v6 = vld [vmem:[#allocation7 + $0x8] sm:$0xff]   ;;  %v736_v7 = vld [vmem:[#allocation5 + $0x20] sm:$0xff]   ;;  %v742_v8 = vld [vmem:[#allocation7 + $0x10] sm:$0xff]  }
  0x5c   :  { %643 = vmatpush3.bf16.msra.mxu0 %v732_v1  ;;  %663 = vmatpush3.bf16.msra.mxu1 %v740_v4  ;;  %v737_v9 = vld [vmem:[#allocation5 + $0x28] sm:$0xff]   ;;  %v743_v10 = vld [vmem:[#allocation7 + $0x18] sm:$0xff]   ;;  %v738_v11 = vld [vmem:[#allocation5 + $0x30] sm:$0xff]  }
  0x5d   :  { %644 = vmatprep.subr.bf16.mxu0 %v913_v0  ;;  %664 = vmatprep.subr.bf16.mxu1 %v913_v0  ;;  %v744_v12 = vld [vmem:[#allocation7 + $0x20] sm:$0xff]   ;;  %v739_v13 = vld [vmem:[#allocation5 + $0x38] sm:$0xff]   ;;  %v745_v14 = vld [vmem:[#allocation7 + $0x28] sm:$0xff]  }
  0x5e   :  { %v100_v15 = vld [vmem:[#allocation2] sm:$0xf]  ;;  %v746_v16 = vld [vmem:[#allocation7 + $0x30] sm:$0xff]   ;;  %v748_v18 = vld [vmem:[#allocation8] sm:$0xff]  }
  0x5f   :  { %v747_v17 = vld [vmem:[#allocation7 + $0x38] sm:$0xff]   ;;  %v749_v19 = vld [vmem:[#allocation8 + $0x8] sm:$0xff]   ;;  %v750_v20 = vld [vmem:[#allocation8 + $0x10] sm:$0xff]  }
  0x60   :  { %645 = vmatpush3.bf16.msra.mxu0 %v733_v2  ;;  %665 = vmatpush3.bf16.msra.mxu1 %v741_v6  ;;  %v751_v21 = vld [vmem:[#allocation8 + $0x18] sm:$0xff]   ;;  %v752_v22 = vld [vmem:[#allocation8 + $0x20] sm:$0xff]   ;;  %v753_v23 = vld [vmem:[#allocation8 + $0x28] sm:$0xff]  }
  0x61   :  { %646 = vmatprep.subr.bf16.mxu0 %v913_v0  ;;  %666 = vmatprep.subr.bf16.mxu1 %v913_v0  ;;  %v570_v24 = vld [vmem:[%s1104_s2] ss:$0 sm:$0xff]  ;;  %v754_v32 = vld [vmem:[#allocation8 + $0x30] sm:$0xff]   ;;  %v756_v34 = vld [vmem:[#allocation10] sm:$0xff]  }
  0x62   :  { %v755_v33 = vld [vmem:[#allocation8 + $0x38] sm:$0xff]   ;;  %v757_v35 = vld [vmem:[#allocation10 + $0x8] sm:$0xff]   ;;  %v758_v36 = vld [vmem:[#allocation10 + $0x10] sm:$0xff]  }
  0x63   :  { %v759_v37 = vld [vmem:[#allocation10 + $0x18] sm:$0xff]   ;;  %v760_v38 = vld [vmem:[#allocation10 + $0x20] sm:$0xff]   ;;  %v761_v39 = vld [vmem:[#allocation10 + $0x28] sm:$0xff]  }
  0x64   :  { %647 = vmatpush3.bf16.msra.mxu0 %v734_v3  ;;  %667 = vmatpush3.bf16.msra.mxu1 %v742_v8  ;;  %v579_v40 = vld [vmem:[%s1106_s4] ss:$0 sm:$0xff]  ;;  %v762_v48 = vld [vmem:[#allocation10 + $0x30] sm:$0xff]  }
  0x65   :  { %648 = vmatprep.subr.bf16.mxu0 %v913_v0  ;;  %668 = vmatprep.subr.bf16.mxu1 %v913_v0  ;;  %v763_v49 = vld [vmem:[#allocation10 + $0x38] sm:$0xff]  }
  0x66   :  { %v588_v50 = vld [vmem:[%s1108_s6] ss:$0 sm:$0xff]  ;;  %s559_s6 = sshll.u32 %s915_s11, 4  ;;  %s560_s6 = int_to_ptr.vmem [resolvable:$true] %s559_s6 }
  0x67   :  { %v597_v58 = vld [vmem:[%s1110_s8] ss:$0 sm:$0xff]  ;;  %s876_s12 = scalar_lea.vmem %s560_s6, 128  ;;  %p881_p13 = scmp.lt.s32.totalorder %s560_s6, %s560_s6 }
  0x68   :  { %649 = vmatpush3.bf16.msra.mxu0 %v735_v5  ;;  %669 = vmatpush3.bf16.msra.mxu1 %v743_v10  ;;  %p877_p12 = scmp.ne.s32.totalorder %s560_s6, %s876_s12  ;;  %p882_p0 = scmp.lt.s32.totalorder %s876_s12, %s876_s12 }
  0x69   :  { %650 = vmatprep.subr.bf16.mxu0 %v913_v0  ;;  %670 = vmatprep.subr.bf16.mxu1 %v913_v0 }
  0x6a   :  { %p883_p1 = por %p882_p0, %p881_p13 }
  0x6c   :  { %651 = vmatpush3.bf16.msra.mxu0 %v736_v7  ;;  %671 = vmatpush3.bf16.msra.mxu1 %v744_v12  ;;  %p884_p2 = pnand %p883_p1, %p877_p12 }
  0x6d   :  { %652 = vmatprep.subr.bf16.mxu0 %v913_v0  ;;  %672 = vmatprep.subr.bf16.mxu1 %v913_v0 }
  0x70   :  { %653 = vmatpush3.bf16.msra.mxu0 %v737_v9  ;;  %673 = vmatpush3.bf16.msra.mxu1 %v745_v14 }
  0x71   :  { %654 = vmatprep.subr.bf16.mxu0 %v913_v0  ;;  %674 = vmatprep.subr.bf16.mxu1 %v913_v0 }
  0x74   :  { %655 = vmatpush3.bf16.msra.mxu0 %v738_v11  ;;  %675 = vmatpush3.bf16.msra.mxu1 %v746_v16 }
  0x75   :  { %656 = vmatprep.subr.bf16.mxu0 %v913_v0  ;;  %676 = vmatprep.subr.bf16.mxu1 %v913_v0 }
  0x78   :  { %657 = vmatpush3.bf16.msra.mxu0 %v739_v13  ;;  %677 = vmatpush3.bf16.msra.mxu1 %v747_v17 }
  0x79   :  { %682 = vmatprep.subr.bf16.mxu0 %v913_v0  ;;  %702 = vmatprep.subr.bf16.mxu1 %v913_v0 }
  0x7b   :  { %659 = vmatmul.mubr.bf16.vlgmr.msra.gmra.mrb[0].mxu0 %v100_v15 }
  0x7c   :  { %698 = vmatprep.mubr.msk.bf16.mxu0 %vm914_vm0, %v913_v0  ;;  %683 = vmatpush3.bf16.msra.mxu0 %v748_v18 }
  0x7d   :  { %684 = vmatprep.subr.bf16.mxu0 %v913_v0 }
  0x80   :  { %685 = vmatpush3.bf16.msra.mxu0 %v749_v19 }
  0x81   :  { %686 = vmatprep.subr.bf16.mxu0 %v913_v0 }
  0x84   :  { %687 = vmatpush3.bf16.msra.mxu0 %v750_v20 }
  0x85   :  { %688 = vmatprep.subr.bf16.mxu0 %v913_v0 }
  0x88   :  { %689 = vmatpush3.bf16.msra.mxu0 %v751_v21 }
  0x89   :  { %690 = vmatprep.subr.bf16.mxu0 %v913_v0 }
  0x8c   :  { %691 = vmatpush3.bf16.msra.mxu0 %v752_v22 }
  0x8d   :  { %692 = vmatprep.subr.bf16.mxu0 %v913_v0 }
  0x90   :  { %693 = vmatpush3.bf16.msra.mxu0 %v753_v23 }
  0x91   :  { %694 = vmatprep.subr.bf16.mxu0 %v913_v0 }
  0x94   :  { %695 = vmatpush3.bf16.msra.mxu0 %v754_v32 }
  0x95   :  { %696 = vmatprep.subr.bf16.mxu0 %v913_v0 }
  0x98   :  { %697 = vmatpush3.bf16.msra.mxu0 %v755_v33 }
 0x14e   :  { %v206_v25 = vpop.f32.mrb[0].mxu0 }
 0x14f   :  { %v207_v26 = vadd.f32 %v570_v24, %v206_v25  ;;  %v660_v27 = vpop.f32.mrb[1].mxu0 }
 0x150   :  { %v209_v28 = vpop.f32.mrb[2].mxu0 }
 0x151   :  { %v212_v29 = vmax.f32 %v207_v26, 0.0  ;;  %v661_v30 = vpop.f32.mrb[3].mxu0 }
 0x153   :  { %v213_v31 = vpack.c.bf16 %v212_v29, %v212_v29 }
 0x155   :  { %679 = vmatmul.mubr.bf16.vlgmr.msra.gmra.mrb[0].mxu1 %v213_v31 }
 0x156   :  { %718 = vmatprep.mubr.msk.bf16.mxu1 %vm914_vm0, %v913_v0  ;;  %703 = vmatpush3.bf16.msra.mxu1 %v756_v34 }
 0x157   :  { %704 = vmatprep.subr.bf16.mxu1 %v913_v0 }
 0x15a   :  { %705 = vmatpush3.bf16.msra.mxu1 %v757_v35 }
 0x15b   :  { %706 = vmatprep.subr.bf16.mxu1 %v913_v0 }
 0x15e   :  { %707 = vmatpush3.bf16.msra.mxu1 %v758_v36 }
 0x15f   :  { %708 = vmatprep.subr.bf16.mxu1 %v913_v0 }
 0x162   :  { %709 = vmatpush3.bf16.msra.mxu1 %v759_v37 }
 0x163   :  { %710 = vmatprep.subr.bf16.mxu1 %v913_v0 }
 0x166   :  { %711 = vmatpush3.bf16.msra.mxu1 %v760_v38 }
 0x167   :  { %712 = vmatprep.subr.bf16.mxu1 %v913_v0 }
 0x16a   :  { %713 = vmatpush3.bf16.msra.mxu1 %v761_v39 }
 0x16b   :  { %714 = vmatprep.subr.bf16.mxu1 %v913_v0 }
 0x16e   :  { %715 = vmatpush3.bf16.msra.mxu1 %v762_v48 }
 0x16f   :  { %716 = vmatprep.subr.bf16.mxu1 %v913_v0 }
 0x172   :  { %717 = vmatpush3.bf16.msra.mxu1 %v763_v49 }
 0x228   :  { %v319_v41 = vpop.f32.mrb[0].mxu1 }
 0x229   :  { %v320_v42 = vadd.f32 %v579_v40, %v319_v41  ;;  %v680_v43 = vpop.f32.mrb[1].mxu1 }
 0x22a   :  { %v322_v44 = vpop.f32.mrb[2].mxu1 }
 0x22b   :  { %v325_v45 = vmax.f32 %v320_v42, 0.0  ;;  %v681_v46 = vpop.f32.mrb[3].mxu1 }
 0x22d   :  { %v326_v47 = vpack.c.bf16 %v325_v45, %v325_v45 }
 0x22f   :  { %699 = vmatmul.mubr.bf16.vlgmr.msra.gmra.mrb[4].mxu0 %v326_v47 }
 0x302   :  { %v432_v51 = vpop.f32.mrb[4].mxu0 }
 0x303   :  { %v433_v52 = vadd.f32 %v588_v50, %v432_v51  ;;  %v700_v53 = vpop.f32.mrb[5].mxu0 }
 0x304   :  { %v435_v54 = vpop.f32.mrb[6].mxu0 }
 0x305   :  { %v438_v55 = vmax.f32 %v433_v52, 0.0  ;;  %v701_v56 = vpop.f32.mrb[7].mxu0 }
 0x307   :  { %v439_v57 = vpack.c.bf16 %v438_v55, %v438_v55 }
 0x309   :  { %719 = vmatmul.mubr.bf16.vlgmr.msra.gmra.mrb[4].mxu1 %v439_v57 }
 0x3dc   :  { %v545_v59 = vpop.f32.mrb[4].mxu1 }
 0x3dd   :  { %v546_v60 = vadd.f32 %v597_v58, %v545_v59  ;;  %v720_v61 = vpop.f32.mrb[5].mxu1 }
 0x3de   :  { %v548_v62 = vpop.f32.mrb[6].mxu1 }
 0x3df   :  { %764 = vtanh.f32 %v546_v60  ;;  %v721_v63 = vpop.f32.mrb[7].mxu1 }
 0x3e9   :  { %v765_v0 = vpop.eup %764 }
 0x3ea   :  { %552 = vst [vmem:[#allocation11] sm:$0xff] %v765_v0 }
 0x3eb   :  { %887 = shalt.err (!%p884_p2)
}
 0x3ec   :  { %s888_s1 = scalar_lea.hbm %s1111_s9, 128 }
 0x3ed   :  { %p889_p3 = scmp.ne.s32.totalorder %s1111_s9, %s888_s1  ;;  %p892_p4 = scmp.lt.u32.totalorder %s888_s1, %s1111_s9 }
 0x3ef   :  { %p894_p5 = pnand %p892_p4, %p889_p3 }
 0x3f1   :  { %897 = shalt.err (!%p894_p5)
}
 0x3f2   :  { %562 = dma.vmem_to_hbm [thread:$0]  %s560_s6, 128, %s1111_s9, [#allocation4]  }
 0x3f3   :  { %904 = dma.done.wait [#allocation4], 128  }
 0x3f4   :  { %905 = vsyncadd [#allocation4], 4294967168 }
 0x3f5   :  { %566 = vsyncpa [#allocation3], 1 }
 0x3f6   :  { %567 = vsyncpa [#allocation6], 1 }
 0x3f7   :  { %568 = vsyncpa [#allocation9], 1 }
 0x3f8   :  { %569 = vsyncpa [#allocation4], 1 }

// kernel: tpu_custom_call.1
= control target key start
LH: loop header
LB: loop body
LE: loop exit
PB: predicated region body
PF: predicated region fallthrough
CT: control target
= control target key end

     0   :  { %14 = vsyncpa [#allocation3], 0  ;;  %s1102_s0 = inlined_call_operand.hbm [shape: bf16[8,128], index: 0, kind: input, shape index: {}]   ;;  %s1103_s1 = inlined_call_operand.hbm [shape: bf16[128,128], index: 1, kind: input, shape index: {}]   ;;  %s1104_s2 = inlined_call_operand.vmem [shape: f32[1,128], index: 2, kind: input, shape index: {}]   ;;  %s1105_s3 = inlined_call_operand.hbm [shape: bf16[128,128], index: 3, kind: input, shape index: {}]   ;;  %s1106_s4 = inlined_call_operand.vmem [shape: f32[1,128], index: 4, kind: input, shape index: {}]   ;;  %s1107_s5 = inlined_call_operand.hbm [shape: bf16[128,128], index: 5, kind: input, shape index: {}]   ;;  %s1108_s6 = inlined_call_operand.vmem [shape: f32[1,128], index: 6, kind: input, shape index: {}]   ;;  %s1109_s7 = inlined_call_operand.hbm [shape: bf16[128,128], index: 7, kind: input, shape index: {}]   ;;  %s1110_s8 = inlined_call_operand.vmem [shape: f32[1,128], index: 8, kind: input, shape index: {}]   ;;  %s1111_s9 = inlined_call_operand.hbm [shape: f32[8,128], index: 9, kind: output, shape index: {}]  }
   0x1   :  { %15 = vsyncpa [#allocation6], 0 }
   0x2   :  { %16 = vsyncpa [#allocation9], 0 }
   0x3   :  { %17 = vsyncpa [#allocation4], 0  ;;  %s906_s30 = smov [#allocation5]   ;;  %s766_s13 = scalar_lea.hbm %s1103_s1, 1024 }
   0x4   :  { %s33_s10 = sshll.u32 %s906_s30, 4  ;;  %p767_p0 = scmp.ne.s32.totalorder %s1103_s1, %s766_s13  ;;  %s34_s10 = int_to_ptr.vmem [resolvable:$true] %s33_s10 }
   0x5   :  { %p770_p1 = scmp.lt.u32.totalorder %s766_s13, %s1103_s1 }
   0x7   :  { %p772_p2 = pnand %p770_p1, %p767_p0 }
   0x9   :  { %775 = shalt.err (!%p772_p2)
}
   0xa   :  { %s776_s18 = scalar_lea.vmem %s34_s10, 1024  ;;  %p781_p4 = scmp.lt.s32.totalorder %s34_s10, %s34_s10 }
   0xb   :  { %p777_p3 = scmp.ne.s32.totalorder %s34_s10, %s776_s18  ;;  %p782_p5 = scmp.lt.s32.totalorder %s776_s18, %s776_s18 }
   0xd   :  { %p783_p6 = por %p782_p5, %p781_p4 }
   0xf   :  { %p784_p7 = pnand %p783_p6, %p777_p3 }
  0x11   :  { %787 = shalt.err (!%p784_p7)
}
  0x12   :  { %s907_s19 = smov 64   ;;  %s908_s20 = smov 4  }
  0x13   :  { %39 = dma.hbm_to_vmem [thread:$0]  %s1103_s1, 1024, %s34_s10, [#allocation6], %s907_s19, %s907_s19, %s908_s20  }
  0x14   :  { %s909_s23 = smov [#allocation8]   ;;  %s910_s25 = smov [#allocation2]  }
  0x15   :  { %s61_s24 = sshll.u32 %s909_s23, 4  ;;  %s24_s26 = sshll.u32 %s910_s25, 4  ;;  %s62_s24 = int_to_ptr.vmem [resolvable:$true] %s61_s24  ;;  %s25_s26 = int_to_ptr.vmem [resolvable:$true] %s24_s26 }
  0x16   :  { %s788_s29 = scalar_lea.hbm %s1107_s5, 1024 }
  0x17   :  { %p789_p8 = scmp.ne.s32.totalorder %s1107_s5, %s788_s29  ;;  %p792_p9 = scmp.lt.u32.totalorder %s788_s29, %s1107_s5 }
  0x19   :  { %p794_p10 = pnand %p792_p9, %p789_p8 }
  0x1b   :  { %797 = shalt.err (!%p794_p10)
}
  0x1c   :  { %s798_s1 = scalar_lea.vmem %s62_s24, 1024  ;;  %p803_p12 = scmp.lt.s32.totalorder %s62_s24, %s62_s24 }
  0x1d   :  { %p799_p11 = scmp.ne.s32.totalorder %s62_s24, %s798_s1  ;;  %p804_p13 = scmp.lt.s32.totalorder %s798_s1, %s798_s1 }
  0x1f   :  { %p805_p0 = por %p804_p13, %p803_p12 }
  0x21   :  { %p806_p1 = pnand %p805_p0, %p799_p11 }
  0x23   :  { %809 = shalt.err (!%p806_p1)
}
  0x24   :  { %67 = dma.hbm_to_vmem [thread:$0]  %s1107_s5, 1024, %s62_s24, [#allocation9], %s907_s19, %s907_s19, %s908_s20  }
  0x25   :  { %s810_s17 = scalar_lea.hbm %s1102_s0, 64 }
  0x26   :  { %p811_p2 = scmp.ne.s32.totalorder %s1102_s0, %s810_s17  ;;  %p814_p3 = scmp.lt.u32.totalorder %s810_s17, %s1102_s0 }
  0x28   :  { %p816_p4 = pnand %p814_p3, %p811_p2 }
  0x2a   :  { %819 = shalt.err (!%p816_p4)
}
  0x2b   :  { %s820_s25 = scalar_lea.vmem %s25_s26, 64  ;;  %p825_p6 = scmp.lt.s32.totalorder %s25_s26, %s25_s26 }
  0x2c   :  { %p821_p5 = scmp.ne.s32.totalorder %s25_s26, %s820_s25  ;;  %p826_p7 = scmp.lt.s32.totalorder %s820_s25, %s820_s25 }
  0x2e   :  { %p827_p8 = por %p826_p7, %p825_p6 }
  0x30   :  { %p828_p9 = pnand %p827_p8, %p821_p5 }
  0x32   :  { %831 = shalt.err (!%p828_p9)
}
  0x33   :  { %27 = dma.hbm_to_vmem [thread:$0]  %s1102_s0, 64, %s25_s26, [#allocation3]  }
  0x34   :  { %s911_s27 = smov [#allocation7]   ;;  %s912_s29 = smov [#allocation10]  }
  0x35   :  { %s47_s28 = sshll.u32 %s911_s27, 4  ;;  %s75_s30 = sshll.u32 %s912_s29, 4  ;;  %s48_s28 = int_to_ptr.vmem [resolvable:$true] %s47_s28  ;;  %s76_s30 = int_to_ptr.vmem [resolvable:$true] %s75_s30 }
  0x36   :  { %s832_s13 = scalar_lea.hbm %s1105_s3, 1024 }
  0x37   :  { %p833_p10 = scmp.ne.s32.totalorder %s1105_s3, %s832_s13  ;;  %p836_p11 = scmp.lt.u32.totalorder %s832_s13, %s1105_s3 }
  0x39   :  { %p838_p12 = pnand %p836_p11, %p833_p10 }
  0x3b   :  { %841 = shalt.err (!%p838_p12)
}
  0x3c   :  { %s842_s0 = scalar_lea.vmem %s48_s28, 1024  ;;  %p847_p0 = scmp.lt.s32.totalorder %s48_s28, %s48_s28 }
  0x3d   :  { %p843_p13 = scmp.ne.s32.totalorder %s48_s28, %s842_s0  ;;  %p848_p1 = scmp.lt.s32.totalorder %s842_s0, %s842_s0 }
  0x3f   :  { %p849_p2 = por %p848_p1, %p847_p0 }
  0x41   :  { %p850_p3 = pnand %p849_p2, %p843_p13 }
  0x43   :  { %853 = shalt.err (!%p850_p3)
}
  0x44   :  { %53 = dma.hbm_to_vmem [thread:$0]  %s1105_s3, 1024, %s48_s28, [#allocation6], %s907_s19, %s907_s19, %s908_s20  }
  0x45   :  { %s854_s21 = scalar_lea.hbm %s1109_s7, 1024 }
  0x46   :  { %p855_p4 = scmp.ne.s32.totalorder %s1109_s7, %s854_s21  ;;  %p858_p5 = scmp.lt.u32.totalorder %s854_s21, %s1109_s7 }
  0x48   :  { %p860_p6 = pnand %p858_p5, %p855_p4 }
  0x4a   :  { %863 = shalt.err (!%p860_p6)
}
  0x4b   :  { %s864_s24 = scalar_lea.vmem %s76_s30, 1024  ;;  %p869_p8 = scmp.lt.s32.totalorder %s76_s30, %s76_s30 }
  0x4c   :  { %p865_p7 = scmp.ne.s32.totalorder %s76_s30, %s864_s24  ;;  %p870_p9 = scmp.lt.s32.totalorder %s864_s24, %s864_s24 }
  0x4e   :  { %p871_p10 = por %p870_p9, %p869_p8 }
  0x50   :  { %p872_p11 = pnand %p871_p10, %p865_p7 }
  0x52   :  { %875 = shalt.err (!%p872_p11)
}
  0x53   :  { %81 = dma.hbm_to_vmem [thread:$0]  %s1109_s7, 1024, %s76_s30, [#allocation9], %s907_s19, %s907_s19, %s908_s20  }
  0x54   :  { %898 = dma.done.wait [#allocation3], 64  }
  0x55   :  { %899 = vsyncadd [#allocation3], 4294967232 }
  0x56   :  { %900 = dma.done.wait [#allocation6], 2048  }
  0x57   :  { %901 = vsyncadd [#allocation6], 4294965248 }
  0x58   :  { %902 = dma.done.wait [#allocation9], 2048  }
  0x59   :  { %903 = vsyncadd [#allocation9], 4294965248  ;;  %v913_v0 = vmov 0.0   ;;  %vm914_vm0 = vmmov 0   ;;  %v732_v1 = vld [vmem:[#allocation5] sm:$0xff]   ;;  %v733_v2 = vld [vmem:[#allocation5 + $0x8] sm:$0xff]  }
  0x5a   :  { %642 = vmatprep.subr.bf16.mxu0 %v913_v0  ;;  %658 = vmatprep.mubr.msk.bf16.mxu0 %vm914_vm0, %v913_v0  ;;  %v734_v3 = vld [vmem:[#allocation5 + $0x10] sm:$0xff]   ;;  %v740_v4 = vld [vmem:[#allocation7] sm:$0xff]   ;;  %v735_v5 = vld [vmem:[#allocation5 + $0x18] sm:$0xff]   ;;  %s915_s11 = smov [#allocation11]  }
  0x5b   :  { %662 = vmatprep.subr.bf16.mxu1 %v913_v0  ;;  %678 = vmatprep.mubr.msk.bf16.mxu1 %vm914_vm0, %v913_v0  ;;  %v741_v6 = vld [vmem:[#allocation7 + $0x8] sm:$0xff]   ;;  %v736_v7 = vld [vmem:[#allocation5 + $0x20] sm:$0xff]   ;;  %v742_v8 = vld [vmem:[#allocation7 + $0x10] sm:$0xff]  }
  0x5c   :  { %643 = vmatpush3.bf16.msra.mxu0 %v732_v1  ;;  %663 = vmatpush3.bf16.msra.mxu1 %v740_v4  ;;  %v737_v9 = vld [vmem:[#allocation5 + $0x28] sm:$0xff]   ;;  %v743_v10 = vld [vmem:[#allocation7 + $0x18] sm:$0xff]   ;;  %v738_v11 = vld [vmem:[#allocation5 + $0x30] sm:$0xff]  }
  0x5d   :  { %644 = vmatprep.subr.bf16.mxu0 %v913_v0  ;;  %664 = vmatprep.subr.bf16.mxu1 %v913_v0  ;;  %v744_v12 = vld [vmem:[#allocation7 + $0x20] sm:$0xff]   ;;  %v739_v13 = vld [vmem:[#allocation5 + $0x38] sm:$0xff]   ;;  %v745_v14 = vld [vmem:[#allocation7 + $0x28] sm:$0xff]  }
  0x5e   :  { %v100_v15 = vld [vmem:[#allocation2] sm:$0xf]  ;;  %v746_v16 = vld [vmem:[#allocation7 + $0x30] sm:$0xff]   ;;  %v748_v18 = vld [vmem:[#allocation8] sm:$0xff]  }
  0x5f   :  { %v747_v17 = vld [vmem:[#allocation7 + $0x38] sm:$0xff]   ;;  %v749_v19 = vld [vmem:[#allocation8 + $0x8] sm:$0xff]   ;;  %v750_v20 = vld [vmem:[#allocation8 + $0x10] sm:$0xff]  }
  0x60   :  { %645 = vmatpush3.bf16.msra.mxu0 %v733_v2  ;;  %665 = vmatpush3.bf16.msra.mxu1 %v741_v6  ;;  %v751_v21 = vld [vmem:[#allocation8 + $0x18] sm:$0xff]   ;;  %v752_v22 = vld [vmem:[#allocation8 + $0x20] sm:$0xff]   ;;  %v753_v23 = vld [vmem:[#allocation8 + $0x28] sm:$0xff]  }
  0x61   :  { %646 = vmatprep.subr.bf16.mxu0 %v913_v0  ;;  %666 = vmatprep.subr.bf16.mxu1 %v913_v0  ;;  %v570_v24 = vld [vmem:[%s1104_s2] ss:$0 sm:$0xff]  ;;  %v754_v32 = vld [vmem:[#allocation8 + $0x30] sm:$0xff]   ;;  %v756_v34 = vld [vmem:[#allocation10] sm:$0xff]  }
  0x62   :  { %v755_v33 = vld [vmem:[#allocation8 + $0x38] sm:$0xff]   ;;  %v757_v35 = vld [vmem:[#allocation10 + $0x8] sm:$0xff]   ;;  %v758_v36 = vld [vmem:[#allocation10 + $0x10] sm:$0xff]  }
  0x63   :  { %v759_v37 = vld [vmem:[#allocation10 + $0x18] sm:$0xff]   ;;  %v760_v38 = vld [vmem:[#allocation10 + $0x20] sm:$0xff]   ;;  %v761_v39 = vld [vmem:[#allocation10 + $0x28] sm:$0xff]  }
  0x64   :  { %647 = vmatpush3.bf16.msra.mxu0 %v734_v3  ;;  %667 = vmatpush3.bf16.msra.mxu1 %v742_v8  ;;  %v579_v40 = vld [vmem:[%s1106_s4] ss:$0 sm:$0xff]  ;;  %v762_v48 = vld [vmem:[#allocation10 + $0x30] sm:$0xff]  }
  0x65   :  { %648 = vmatprep.subr.bf16.mxu0 %v913_v0  ;;  %668 = vmatprep.subr.bf16.mxu1 %v913_v0  ;;  %v763_v49 = vld [vmem:[#allocation10 + $0x38] sm:$0xff]  }
  0x66   :  { %v588_v50 = vld [vmem:[%s1108_s6] ss:$0 sm:$0xff]  ;;  %s559_s6 = sshll.u32 %s915_s11, 4  ;;  %s560_s6 = int_to_ptr.vmem [resolvable:$true] %s559_s6 }
  0x67   :  { %v597_v58 = vld [vmem:[%s1110_s8] ss:$0 sm:$0xff]  ;;  %s876_s12 = scalar_lea.vmem %s560_s6, 128  ;;  %p881_p13 = scmp.lt.s32.totalorder %s560_s6, %s560_s6 }
  0x68   :  { %649 = vmatpush3.bf16.msra.mxu0 %v735_v5  ;;  %669 = vmatpush3.bf16.msra.mxu1 %v743_v10  ;;  %p877_p12 = scmp.ne.s32.totalorder %s560_s6, %s876_s12  ;;  %p882_p0 = scmp.lt.s32.totalorder %s876_s12, %s876_s12 }
  0x69   :  { %650 = vmatprep.subr.bf16.mxu0 %v913_v0  ;;  %670 = vmatprep.subr.bf16.mxu1 %v913_v0 }
  0x6a   :  { %p883_p1 = por %p882_p0, %p881_p13 }
  0x6c   :  { %651 = vmatpush3.bf16.msra.mxu0 %v736_v7  ;;  %671 = vmatpush3.bf16.msra.mxu1 %v744_v12  ;;  %p884_p2 = pnand %p883_p1, %p877_p12 }
  0x6d   :  { %652 = vmatprep.subr.bf16.mxu0 %v913_v0  ;;  %672 = vmatprep.subr.bf16.mxu1 %v913_v0 }
  0x70   :  { %653 = vmatpush3.bf16.msra.mxu0 %v737_v9  ;;  %673 = vmatpush3.bf16.msra.mxu1 %v745_v14 }
  0x71   :  { %654 = vmatprep.subr.bf16.mxu0 %v913_v0  ;;  %674 = vmatprep.subr.bf16.mxu1 %v913_v0 }
  0x74   :  { %655 = vmatpush3.bf16.msra.mxu0 %v738_v11  ;;  %675 = vmatpush3.bf16.msra.mxu1 %v746_v16 }
  0x75   :  { %656 = vmatprep.subr.bf16.mxu0 %v913_v0  ;;  %676 = vmatprep.subr.bf16.mxu1 %v913_v0 }
  0x78   :  { %657 = vmatpush3.bf16.msra.mxu0 %v739_v13  ;;  %677 = vmatpush3.bf16.msra.mxu1 %v747_v17 }
  0x79   :  { %682 = vmatprep.subr.bf16.mxu0 %v913_v0  ;;  %702 = vmatprep.subr.bf16.mxu1 %v913_v0 }
  0x7b   :  { %659 = vmatmul.mubr.bf16.vlgmr.msra.gmra.mrb[0].mxu0 %v100_v15 }
  0x7c   :  { %698 = vmatprep.mubr.msk.bf16.mxu0 %vm914_vm0, %v913_v0  ;;  %683 = vmatpush3.bf16.msra.mxu0 %v748_v18 }
  0x7d   :  { %684 = vmatprep.subr.bf16.mxu0 %v913_v0 }
  0x80   :  { %685 = vmatpush3.bf16.msra.mxu0 %v749_v19 }
  0x81   :  { %686 = vmatprep.subr.bf16.mxu0 %v913_v0 }
  0x84   :  { %687 = vmatpush3.bf16.msra.mxu0 %v750_v20 }
  0x85   :  { %688 = vmatprep.subr.bf16.mxu0 %v913_v0 }
  0x88   :  { %689 = vmatpush3.bf16.msra.mxu0 %v751_v21 }
  0x89   :  { %690 = vmatprep.subr.bf16.mxu0 %v913_v0 }
  0x8c   :  { %691 = vmatpush3.bf16.msra.mxu0 %v752_v22 }
  0x8d   :  { %692 = vmatprep.subr.bf16.mxu0 %v913_v0 }
  0x90   :  { %693 = vmatpush3.bf16.msra.mxu0 %v753_v23 }
  0x91   :  { %694 = vmatprep.subr.bf16.mxu0 %v913_v0 }
  0x94   :  { %695 = vmatpush3.bf16.msra.mxu0 %v754_v32 }
  0x95   :  { %696 = vmatprep.subr.bf16.mxu0 %v913_v0 }
  0x98   :  { %697 = vmatpush3.bf16.msra.mxu0 %v755_v33 }
 0x14e   :  { %v206_v25 = vpop.f32.mrb[0].mxu0 }
 0x14f   :  { %v207_v26 = vadd.f32 %v570_v24, %v206_v25  ;;  %v660_v27 = vpop.f32.mrb[1].mxu0 }
 0x150   :  { %v209_v28 = vpop.f32.mrb[2].mxu0 }
 0x151   :  { %v212_v29 = vmax.f32 %v207_v26, 0.0  ;;  %v661_v30 = vpop.f32.mrb[3].mxu0 }
 0x153   :  { %v213_v31 = vpack.c.bf16 %v212_v29, %v212_v29 }
 0x155   :  { %679 = vmatmul.mubr.bf16.vlgmr.msra.gmra.mrb[0].mxu1 %v213_v31 }
 0x156   :  { %718 = vmatprep.mubr.msk.bf16.mxu1 %vm914_vm0, %v913_v0  ;;  %703 = vmatpush3.bf16.msra.mxu1 %v756_v34 }
 0x157   :  { %704 = vmatprep.subr.bf16.mxu1 %v913_v0 }
 0x15a   :  { %705 = vmatpush3.bf16.msra.mxu1 %v757_v35 }
 0x15b   :  { %706 = vmatprep.subr.bf16.mxu1 %v913_v0 }
 0x15e   :  { %707 = vmatpush3.bf16.msra.mxu1 %v758_v36 }
 0x15f   :  { %708 = vmatprep.subr.bf16.mxu1 %v913_v0 }
 0x162   :  { %709 = vmatpush3.bf16.msra.mxu1 %v759_v37 }
 0x163   :  { %710 = vmatprep.subr.bf16.mxu1 %v913_v0 }
 0x166   :  { %711 = vmatpush3.bf16.msra.mxu1 %v760_v38 }
 0x167   :  { %712 = vmatprep.subr.bf16.mxu1 %v913_v0 }
 0x16a   :  { %713 = vmatpush3.bf16.msra.mxu1 %v761_v39 }
 0x16b   :  { %714 = vmatprep.subr.bf16.mxu1 %v913_v0 }
 0x16e   :  { %715 = vmatpush3.bf16.msra.mxu1 %v762_v48 }
 0x16f   :  { %716 = vmatprep.subr.bf16.mxu1 %v913_v0 }
 0x172   :  { %717 = vmatpush3.bf16.msra.mxu1 %v763_v49 }
 0x228   :  { %v319_v41 = vpop.f32.mrb[0].mxu1 }
 0x229   :  { %v320_v42 = vadd.f32 %v579_v40, %v319_v41  ;;  %v680_v43 = vpop.f32.mrb[1].mxu1 }
 0x22a   :  { %v322_v44 = vpop.f32.mrb[2].mxu1 }
 0x22b   :  { %v325_v45 = vmax.f32 %v320_v42, 0.0  ;;  %v681_v46 = vpop.f32.mrb[3].mxu1 }
 0x22d   :  { %v326_v47 = vpack.c.bf16 %v325_v45, %v325_v45 }
 0x22f   :  { %699 = vmatmul.mubr.bf16.vlgmr.msra.gmra.mrb[4].mxu0 %v326_v47 }
 0x302   :  { %v432_v51 = vpop.f32.mrb[4].mxu0 }
 0x303   :  { %v433_v52 = vadd.f32 %v588_v50, %v432_v51  ;;  %v700_v53 = vpop.f32.mrb[5].mxu0 }
 0x304   :  { %v435_v54 = vpop.f32.mrb[6].mxu0 }
 0x305   :  { %v438_v55 = vmax.f32 %v433_v52, 0.0  ;;  %v701_v56 = vpop.f32.mrb[7].mxu0 }
 0x307   :  { %v439_v57 = vpack.c.bf16 %v438_v55, %v438_v55 }
 0x309   :  { %719 = vmatmul.mubr.bf16.vlgmr.msra.gmra.mrb[4].mxu1 %v439_v57 }
 0x3dc   :  { %v545_v59 = vpop.f32.mrb[4].mxu1 }
 0x3dd   :  { %v546_v60 = vadd.f32 %v597_v58, %v545_v59  ;;  %v720_v61 = vpop.f32.mrb[5].mxu1 }
 0x3de   :  { %v548_v62 = vpop.f32.mrb[6].mxu1 }
 0x3df   :  { %764 = vtanh.f32 %v546_v60  ;;  %v721_v63 = vpop.f32.mrb[7].mxu1 }
 0x3e9   :  { %v765_v0 = vpop.eup %764 }
 0x3ea   :  { %552 = vst [vmem:[#allocation11] sm:$0xff] %v765_v0 }
 0x3eb   :  { %887 = shalt.err (!%p884_p2)
}
 0x3ec   :  { %s888_s1 = scalar_lea.hbm %s1111_s9, 128 }
 0x3ed   :  { %p889_p3 = scmp.ne.s32.totalorder %s1111_s9, %s888_s1  ;;  %p892_p4 = scmp.lt.u32.totalorder %s888_s1, %s1111_s9 }
 0x3ef   :  { %p894_p5 = pnand %p892_p4, %p889_p3 }
 0x3f1   :  { %897 = shalt.err (!%p894_p5)
}
 0x3f2   :  { %562 = dma.vmem_to_hbm [thread:$0]  %s560_s6, 128, %s1111_s9, [#allocation4]  }
 0x3f3   :  { %904 = dma.done.wait [#allocation4], 128  }
 0x3f4   :  { %905 = vsyncadd [#allocation4], 4294967168 }
 0x3f5   :  { %566 = vsyncpa [#allocation3], 1 }
 0x3f6   :  { %567 = vsyncpa [#allocation6], 1 }
 0x3f7   :  { %568 = vsyncpa [#allocation9], 1 }
 0x3f8   :  { %569 = vsyncpa [#allocation4], 1 }

</bundles_post_ra>
